<compile_context>
chip_gen: v6e
topology: v6e:2x2x1
jax: 0.10.0
libtpu: 0.0.40
codegen_flags: <defaults>
</compile_context>

<pallas_src>
import functools

import jax
import jax.numpy as jnp
from jax.experimental import pallas as pl
from jax.experimental.pallas import tpu as pltpu


def _round_up(n, m):
    return ((n + m - 1) // m) * m


def _mish(v):
    # mish(v) = v * tanh(softplus(v)).  Single-exp rewrite:
    #   tanh(log(1 + e^v)) = ((1 + e^v)^2 - 1) / ((1 + e^v)^2 + 1)
    # -> one EUP exp + one approx reciprocal (EUP) + VPU ops instead of
    # exp + log + tanh (3 EUP ops) or a full Newton-sequence divide.
    # Clamp keeps (1 + e^v)^2 in f32 range; for v >= 20, mish(v) == v anyway.
    t = jnp.exp(jnp.minimum(v, 20.0))
    p = (1.0 + t) * (1.0 + t)
    d = p + 1.0
    r = pl.reciprocal(d, approx=True)
    r = r * (2.0 - d * r)          # one Newton-Raphson step -> ~f32 accuracy, VPU only
    return v * (p - 1.0) * r


def _matmul_fm(w, act_bm):
    """Feature-major matmul: w (out_f, in_f), act_bm (tb, in_f) -> (out_f, tb).

    Contracts both operands on their last (feature) dim, i.e. W @ act^T, so the
    (large) batch lands on the MXU lane/N axis and M stays tiny.
    """
    return jax.lax.dot_general(w, act_bm,
                               dimension_numbers=(((1,), (1,)), ((), ())),
                               preferred_element_type=jnp.float32)


def _crmlp_kernel(cond_predict_scale, has_res_proj, hidden_dim, out_dim,
                  x_ref, cond_ref, w0_ref, b0_ref, w0b_ref, b0b_ref,
                  ce_w_ref, ce_b_ref, w1a_ref, b1a_ref, w1b_ref, b1b_ref,
                  out_ref):
    """One batch tile. Activation refs are batch-major (tb, feat); weights are
    PyTorch-layout (out, in); biases are (out, 1) (broadcast over lanes)."""
    f32 = jnp.float32
    x = x_ref[...].astype(f32)            # (tb, in_dim)
    c = cond_ref[...].astype(f32)         # (tb, cond_dim)

    # blocks[0] first Linear (+ folded residual projection): batch on lanes.
    hr = _matmul_fm(w0_ref[...], x) + b0_ref[...]              # (hidden[+out], tb)
    if has_res_proj:
        h = _mish(hr[:hidden_dim])                             # (hidden, tb)
        res_fm = hr[hidden_dim:]                               # (out_dim, tb)
    else:
        h = _mish(hr)
    out = jnp.dot(w0b_ref[...], h, preferred_element_type=f32) + b0b_ref[...]   # (out, tb)

    # cond_encoder: Mish -> Linear.  Transpose cond to feature-major first so the
    # Mish runs on lane-dense vregs (XLU transpose; XLU slot is otherwise idle).
    cm = _mish(jnp.transpose(c))                               # (cond_dim, tb)
    emb = jnp.dot(ce_w_ref[...], cm, preferred_element_type=f32) + ce_b_ref[...]
    if cond_predict_scale:
        # Sublane-aligned row split of the merged FiLM embedding.
        out = emb[:out_dim] * out + emb[out_dim:]
    else:
        out = out + emb

    # blocks[1]: Linear -> Mish -> Linear.
    h = _mish(jnp.dot(w1a_ref[...], out, preferred_element_type=f32) + b1a_ref[...])
    out = jnp.dot(w1b_ref[...], h, preferred_element_type=f32) + b1b_ref[...]    # (out, tb)

    # Residual add + single transpose back to batch-major for a direct store.
    if has_res_proj:
        out_bm = jnp.transpose(out + res_fm)                   # (tb, out_dim)
    else:
        out_bm = jnp.transpose(out) + x                        # identity residual
    out_ref[...] = out_bm.astype(out_ref.dtype)


def make_params(key, in_dim, out_dim, cond_dim, hidden_dim, cond_predict_scale):
    """Deterministic synthetic parameters, PyTorch nn.Linear layout:
    weights (out_features, in_features), biases (out_features, 1)."""
    cond_channels = out_dim * 2 if cond_predict_scale else out_dim

    def linear(k, fan_in, fan_out):
        kw, kb = jax.random.split(k)
        bound = 1.0 / jnp.sqrt(fan_in)
        w = jax.random.uniform(kw, (fan_out, fan_in), jnp.float32, -bound, bound)
        b = jax.random.uniform(kb, (fan_out, 1), jnp.float32, -bound, bound)
        return w, b

    ks = jax.random.split(key, 6)
    w0a, b0a = linear(ks[0], in_dim, hidden_dim)
    w0b, b0b = linear(ks[1], hidden_dim, out_dim)
    ce_w, ce_b = linear(ks[2], cond_dim, cond_channels)
    w1a, b1a = linear(ks[3], out_dim, hidden_dim)
    w1b, b1b = linear(ks[4], hidden_dim, out_dim)
    params = dict(w0a=w0a, b0a=b0a, w0b=w0b, b0b=b0b, ce_w=ce_w, ce_b=ce_b,
                  w1a=w1a, b1a=b1a, w1b=w1b, b1b=b1b)
    if in_dim != out_dim:
        res_w, res_b = linear(ks[5], in_dim, out_dim)
        params.update(res_w=res_w, res_b=res_b)
    return params


def conditional_residual_mlp(x, cond, params, *, out_dim, cond_predict_scale,
                             tile_b=2048):
    """x: (B, in_dim), cond: (B, cond_dim) -> (B, out_dim). No wrapper HBM passes."""
    B, in_dim = x.shape
    cond_dim = cond.shape[1]
    hidden_dim = params["w0a"].shape[0]
    has_res_proj = in_dim != out_dim

    if has_res_proj:
        # Fold residual_conv into the first Linear (tiny weight concat, done once
        # per call on weights only): one MXU stream, split at row hidden_dim.
        w0 = jnp.concatenate([params["w0a"], params["res_w"]], axis=0)
        b0 = jnp.concatenate([params["b0a"], params["res_b"]], axis=0)
    else:
        w0, b0 = params["w0a"], params["b0a"]

    weight_args = (w0, b0, params["w0b"], params["b0b"],
                   params["ce_w"], params["ce_b"],
                   params["w1a"], params["b1a"], params["w1b"], params["b1b"])

    # Batch tile (sublane axis of the HBM blocks, lane axis inside the kernel).
    # Large tiles amortize the ~0.35us per-grid-step overhead; VMEM stays tiny
    # (<~3 MB double-buffered even at tb=8192) on every TPU generation.
    tb = min(tile_b, _round_up(B, 8))
    if B >= 1024 and pl.cdiv(B, tb) < 2:
        # v7x has 2 TensorCores; keep >= 2 grid steps so the "parallel" batch
        # axis feeds both of them.
        tb = _round_up(pl.cdiv(B, 2), 128)
    grid = (pl.cdiv(B, tb),)

    in_specs = ([pl.BlockSpec((tb, in_dim), lambda i: (i, 0)),
                 pl.BlockSpec((tb, cond_dim), lambda i: (i, 0))]
                + [pl.BlockSpec(w.shape, lambda i: (0, 0)) for w in weight_args])
    out_specs = pl.BlockSpec((tb, out_dim), lambda i: (i, 0))

    cond_channels = 2 * out_dim if cond_predict_scale else out_dim
    flops = 2 * B * ((hidden_dim + (out_dim if has_res_proj else 0)) * in_dim
                     + hidden_dim * out_dim            # blocks[0] second Linear
                     + cond_channels * cond_dim        # cond encoder
                     + out_dim * hidden_dim            # blocks[1] first Linear
                     + hidden_dim * out_dim)           # blocks[1] second Linear
    transcendentals = 2 * B * (2 * hidden_dim + cond_dim)  # exp + approx recip / mish
    bytes_accessed = int(x.size * x.dtype.itemsize
                         + cond.size * cond.dtype.itemsize
                         + B * out_dim * x.dtype.itemsize
                         + sum(int(w.size) * w.dtype.itemsize for w in weight_args))

    kernel = functools.partial(_crmlp_kernel, cond_predict_scale, has_res_proj,
                               hidden_dim, out_dim)

    return pl.pallas_call(
        kernel,
        out_shape=jax.ShapeDtypeStruct((B, out_dim), x.dtype),
        grid=grid,
        in_specs=in_specs,
        out_specs=out_specs,
        compiler_params=pltpu.CompilerParams(
            dimension_semantics=("parallel",),
        ),
        cost_estimate=pl.CostEstimate(flops=flops,
                                      transcendentals=transcendentals,
                                      bytes_accessed=bytes_accessed),
    )(x, cond, *weight_args)


def reference(x, cond, params, *, out_dim, cond_predict_scale):
    """Pure-JAX reference replicating the PyTorch forward exactly
    (PyTorch-layout weights: y = x @ W.T + b), HIGHEST-precision matmuls."""
    hp = jax.lax.Precision.HIGHEST

    def mish(v):
        return v * jnp.tanh(jax.nn.softplus(v))

    def lin(v, w, b):
        return jnp.dot(v, w.T, precision=hp) + b[:, 0]

    h = mish(lin(x, params["w0a"], params["b0a"]))
    out = lin(h, params["w0b"], params["b0b"])
    embed = lin(mish(cond), params["ce_w"], params["ce_b"])
    if cond_predict_scale:
        out = embed[:, :out_dim] * out + embed[:, out_dim:]
    else:
        out = out + embed
    h = mish(lin(out, params["w1a"], params["b1a"]))
    out = lin(h, params["w1b"], params["b1b"])
    res = lin(x, params["res_w"], params["res_b"]) if "res_w" in params else x
    return out + res


if __name__ == "__main__":
    B, out_dim, cond_dim, hidden_dim = 8, 8, 12, 32

    key = jax.random.PRNGKey(0)
    kx1, kx2, kc, kp1, kp2 = jax.random.split(key, 5)
    cond = jax.random.normal(kc, (B, cond_dim), jnp.float32)

    ok = True
    # Exercise both static paths: residual projection (in_dim != out_dim) and
    # identity residual (in_dim == out_dim), each with/without FiLM scale.
    for in_dim, kx, kp in ((16, kx1, kp1), (out_dim, kx2, kp2)):
        x = jax.random.normal(kx, (B, in_dim), jnp.float32)
        for cond_predict_scale in (False, True):
            params = make_params(kp, in_dim, out_dim, cond_dim, hidden_dim,
                                 cond_predict_scale)
            out = conditional_residual_mlp(
                x, cond, params, out_dim=out_dim,
                cond_predict_scale=cond_predict_scale)
            out = jax.block_until_ready(out)
            ref = reference(x, cond, params, out_dim=out_dim,
                            cond_predict_scale=cond_predict_scale)
            # Tolerance covers MXU f32 pass-precision differences and the
            # approx-reciprocal Mish path; real wiring bugs produce O(0.1+) errors.
            if not jnp.allclose(out, ref, atol=2e-3, rtol=2e-3):
                ok = False

    print("KERNEL_OK" if ok else "KERNEL_MISMATCH")
</pallas_src>

<mosaic_0001>
module attributes {stable_mosaic.version = 11 : i64} {
  func.func @_crmlp_kernel(%arg0: i32, %arg1: memref<8x16xf32, #tpu.memory_space<vmem>>, %arg2: memref<8x12xf32, #tpu.memory_space<vmem>>, %arg3: memref<40x16xf32, #tpu.memory_space<vmem>>, %arg4: memref<40x1xf32, #tpu.memory_space<vmem>>, %arg5: memref<8x32xf32, #tpu.memory_space<vmem>>, %arg6: memref<8x1xf32, #tpu.memory_space<vmem>>, %arg7: memref<8x12xf32, #tpu.memory_space<vmem>>, %arg8: memref<8x1xf32, #tpu.memory_space<vmem>>, %arg9: memref<32x8xf32, #tpu.memory_space<vmem>>, %arg10: memref<32x1xf32, #tpu.memory_space<vmem>>, %arg11: memref<8x32xf32, #tpu.memory_space<vmem>>, %arg12: memref<8x1xf32, #tpu.memory_space<vmem>>, %arg13: memref<8x8xf32, #tpu.memory_space<vmem>>) attributes {dimension_semantics = [#tpu.dimension_semantics<parallel>], iteration_bounds = array<i64: 1>, scalar_prefetch = 0 : i64, scratch_operands = 0 : i64, tpu.core_type = #tpu.core_type<tc>, window_params = [{transform_indices = @transform_0, window_bounds = array<i64: 8, 16>}, {transform_indices = @transform_1, window_bounds = array<i64: 8, 12>}, {pipeline_mode = #tpu.pipeline_mode<synchronous>, transform_indices = @transform_2, window_bounds = array<i64: 40, 16>}, {pipeline_mode = #tpu.pipeline_mode<synchronous>, transform_indices = @transform_3, window_bounds = array<i64: 40, 1>}, {pipeline_mode = #tpu.pipeline_mode<synchronous>, transform_indices = @transform_4, window_bounds = array<i64: 8, 32>}, {pipeline_mode = #tpu.pipeline_mode<synchronous>, transform_indices = @transform_5, window_bounds = array<i64: 8, 1>}, {pipeline_mode = #tpu.pipeline_mode<synchronous>, transform_indices = @transform_6, window_bounds = array<i64: 8, 12>}, {pipeline_mode = #tpu.pipeline_mode<synchronous>, transform_indices = @transform_7, window_bounds = array<i64: 8, 1>}, {pipeline_mode = #tpu.pipeline_mode<synchronous>, transform_indices = @transform_8, window_bounds = array<i64: 32, 8>}, {pipeline_mode = #tpu.pipeline_mode<synchronous>, transform_indices = @transform_9, window_bounds = array<i64: 32, 1>}, {pipeline_mode = #tpu.pipeline_mode<synchronous>, transform_indices = @transform_10, window_bounds = array<i64: 8, 32>}, {pipeline_mode = #tpu.pipeline_mode<synchronous>, transform_indices = @transform_11, window_bounds = array<i64: 8, 1>}, {transform_indices = @transform_12, window_bounds = array<i64: 8, 8>}]} {
    %c0 = arith.constant 0 : index
    %c0_0 = arith.constant 0 : index
    %0 = vector.load %arg1[%c0, %c0_0] : memref<8x16xf32, #tpu.memory_space<vmem>>, vector<8x16xf32>
    %c0_1 = arith.constant 0 : index
    %c0_2 = arith.constant 0 : index
    %1 = vector.load %arg2[%c0_1, %c0_2] : memref<8x12xf32, #tpu.memory_space<vmem>>, vector<8x12xf32>
    %c0_3 = arith.constant 0 : index
    %c0_4 = arith.constant 0 : index
    %2 = vector.load %arg3[%c0_3, %c0_4] : memref<40x16xf32, #tpu.memory_space<vmem>>, vector<40x16xf32>
    %cst = arith.constant dense<0.000000e+00> : vector<40x8xf32>
    %3 = tpu.matmul %2, %0, %cst {dimension_numbers = #tpu.dot_dimension_numbers<[1], [1], [0], [0], [0, 0, 1, 0], [], []>} : vector<40x16xf32>, vector<8x16xf32>, vector<40x8xf32> -> vector<40x8xf32>
    %c0_5 = arith.constant 0 : index
    %c0_6 = arith.constant 0 : index
    %4 = vector.load %arg4[%c0_5, %c0_6] : memref<40x1xf32, #tpu.memory_space<vmem>>, vector<40x1xf32>
    %5 = vector.broadcast %4 : vector<40x1xf32> to vector<40x8xf32>
    %6 = arith.addf %3, %5 : vector<40x8xf32>
    %7 = vector.extract_strided_slice %6 {offsets = [0, 0], sizes = [32, 8], strides = [1, 1]} : vector<40x8xf32> to vector<32x8xf32>
    %cst_7 = arith.constant 2.000000e+01 : f32
    %8 = vector.broadcast %cst_7 : f32 to vector<32x8xf32>
    %9 = arith.minimumf %7, %8 : vector<32x8xf32>
    %10 = math.exp %9 : vector<32x8xf32>
    %cst_8 = arith.constant 1.000000e+00 : f32
    %11 = vector.broadcast %cst_8 : f32 to vector<32x8xf32>
    %12 = arith.addf %11, %10 : vector<32x8xf32>
    %cst_9 = arith.constant 1.000000e+00 : f32
    %13 = vector.broadcast %cst_9 : f32 to vector<32x8xf32>
    %14 = arith.addf %13, %10 : vector<32x8xf32>
    %15 = arith.mulf %12, %14 : vector<32x8xf32>
    %cst_10 = arith.constant 1.000000e+00 : f32
    %16 = vector.broadcast %cst_10 : f32 to vector<32x8xf32>
    %17 = arith.addf %15, %16 : vector<32x8xf32>
    %18 = tpu.reciprocal %17 {approx = true} : vector<32x8xf32> -> vector<32x8xf32>
    %19 = arith.mulf %17, %18 : vector<32x8xf32>
    %cst_11 = arith.constant 2.000000e+00 : f32
    %20 = vector.broadcast %cst_11 : f32 to vector<32x8xf32>
    %21 = arith.subf %20, %19 : vector<32x8xf32>
    %22 = arith.mulf %18, %21 : vector<32x8xf32>
    %cst_12 = arith.constant 1.000000e+00 : f32
    %23 = vector.broadcast %cst_12 : f32 to vector<32x8xf32>
    %24 = arith.subf %15, %23 : vector<32x8xf32>
    %25 = arith.mulf %7, %24 : vector<32x8xf32>
    %26 = arith.mulf %25, %22 : vector<32x8xf32>
    %27 = vector.extract_strided_slice %6 {offsets = [32, 0], sizes = [8, 8], strides = [1, 1]} : vector<40x8xf32> to vector<8x8xf32>
    %c0_13 = arith.constant 0 : index
    %c0_14 = arith.constant 0 : index
    %28 = vector.load %arg5[%c0_13, %c0_14] : memref<8x32xf32, #tpu.memory_space<vmem>>, vector<8x32xf32>
    %cst_15 = arith.constant dense<0.000000e+00> : vector<8x8xf32>
    %29 = tpu.matmul %28, %26, %cst_15 {dimension_numbers = #tpu.dot_dimension_numbers<[1], [0], [0], [1], [0, 0, 1, 1], [], []>} : vector<8x32xf32>, vector<32x8xf32>, vector<8x8xf32> -> vector<8x8xf32>
    %c0_16 = arith.constant 0 : index
    %c0_17 = arith.constant 0 : index
    %30 = vector.load %arg6[%c0_16, %c0_17] : memref<8x1xf32, #tpu.memory_space<vmem>>, vector<8x1xf32>
    %31 = vector.broadcast %30 : vector<8x1xf32> to vector<8x8xf32>
    %32 = arith.addf %29, %31 : vector<8x8xf32>
    %33 = tpu.transpose %1, [1, 0] : vector<8x12xf32> -> vector<12x8xf32>
    %cst_18 = arith.constant 2.000000e+01 : f32
    %34 = vector.broadcast %cst_18 : f32 to vector<12x8xf32>
    %35 = arith.minimumf %33, %34 : vector<12x8xf32>
    %36 = math.exp %35 : vector<12x8xf32>
    %cst_19 = arith.constant 1.000000e+00 : f32
    %37 = vector.broadcast %cst_19 : f32 to vector<12x8xf32>
    %38 = arith.addf %37, %36 : vector<12x8xf32>
    %cst_20 = arith.constant 1.000000e+00 : f32
    %39 = vector.broadcast %cst_20 : f32 to vector<12x8xf32>
    %40 = arith.addf %39, %36 : vector<12x8xf32>
    %41 = arith.mulf %38, %40 : vector<12x8xf32>
    %cst_21 = arith.constant 1.000000e+00 : f32
    %42 = vector.broadcast %cst_21 : f32 to vector<12x8xf32>
    %43 = arith.addf %41, %42 : vector<12x8xf32>
    %44 = tpu.reciprocal %43 {approx = true} : vector<12x8xf32> -> vector<12x8xf32>
    %45 = arith.mulf %43, %44 : vector<12x8xf32>
    %cst_22 = arith.constant 2.000000e+00 : f32
    %46 = vector.broadcast %cst_22 : f32 to vector<12x8xf32>
    %47 = arith.subf %46, %45 : vector<12x8xf32>
    %48 = arith.mulf %44, %47 : vector<12x8xf32>
    %cst_23 = arith.constant 1.000000e+00 : f32
    %49 = vector.broadcast %cst_23 : f32 to vector<12x8xf32>
    %50 = arith.subf %41, %49 : vector<12x8xf32>
    %51 = arith.mulf %33, %50 : vector<12x8xf32>
    %52 = arith.mulf %51, %48 : vector<12x8xf32>
    %c0_24 = arith.constant 0 : index
    %c0_25 = arith.constant 0 : index
    %53 = vector.load %arg7[%c0_24, %c0_25] : memref<8x12xf32, #tpu.memory_space<vmem>>, vector<8x12xf32>
    %cst_26 = arith.constant dense<0.000000e+00> : vector<8x8xf32>
    %54 = tpu.matmul %53, %52, %cst_26 {dimension_numbers = #tpu.dot_dimension_numbers<[1], [0], [0], [1], [0, 0, 1, 1], [], []>} : vector<8x12xf32>, vector<12x8xf32>, vector<8x8xf32> -> vector<8x8xf32>
    %c0_27 = arith.constant 0 : index
    %c0_28 = arith.constant 0 : index
    %55 = vector.load %arg8[%c0_27, %c0_28] : memref<8x1xf32, #tpu.memory_space<vmem>>, vector<8x1xf32>
    %56 = vector.broadcast %55 : vector<8x1xf32> to vector<8x8xf32>
    %57 = arith.addf %54, %56 : vector<8x8xf32>
    %58 = arith.addf %32, %57 : vector<8x8xf32>
    %c0_29 = arith.constant 0 : index
    %c0_30 = arith.constant 0 : index
    %59 = vector.load %arg9[%c0_29, %c0_30] : memref<32x8xf32, #tpu.memory_space<vmem>>, vector<32x8xf32>
    %cst_31 = arith.constant dense<0.000000e+00> : vector<32x8xf32>
    %60 = tpu.matmul %59, %58, %cst_31 {dimension_numbers = #tpu.dot_dimension_numbers<[1], [0], [0], [1], [0, 0, 1, 1], [], []>} : vector<32x8xf32>, vector<8x8xf32>, vector<32x8xf32> -> vector<32x8xf32>
    %c0_32 = arith.constant 0 : index
    %c0_33 = arith.constant 0 : index
    %61 = vector.load %arg10[%c0_32, %c0_33] : memref<32x1xf32, #tpu.memory_space<vmem>>, vector<32x1xf32>
    %62 = vector.broadcast %61 : vector<32x1xf32> to vector<32x8xf32>
    %63 = arith.addf %60, %62 : vector<32x8xf32>
    %cst_34 = arith.constant 2.000000e+01 : f32
    %64 = vector.broadcast %cst_34 : f32 to vector<32x8xf32>
    %65 = arith.minimumf %63, %64 : vector<32x8xf32>
    %66 = math.exp %65 : vector<32x8xf32>
    %cst_35 = arith.constant 1.000000e+00 : f32
    %67 = vector.broadcast %cst_35 : f32 to vector<32x8xf32>
    %68 = arith.addf %67, %66 : vector<32x8xf32>
    %cst_36 = arith.constant 1.000000e+00 : f32
    %69 = vector.broadcast %cst_36 : f32 to vector<32x8xf32>
    %70 = arith.addf %69, %66 : vector<32x8xf32>
    %71 = arith.mulf %68, %70 : vector<32x8xf32>
    %cst_37 = arith.constant 1.000000e+00 : f32
    %72 = vector.broadcast %cst_37 : f32 to vector<32x8xf32>
    %73 = arith.addf %71, %72 : vector<32x8xf32>
    %74 = tpu.reciprocal %73 {approx = true} : vector<32x8xf32> -> vector<32x8xf32>
    %75 = arith.mulf %73, %74 : vector<32x8xf32>
    %cst_38 = arith.constant 2.000000e+00 : f32
    %76 = vector.broadcast %cst_38 : f32 to vector<32x8xf32>
    %77 = arith.subf %76, %75 : vector<32x8xf32>
    %78 = arith.mulf %74, %77 : vector<32x8xf32>
    %cst_39 = arith.constant 1.000000e+00 : f32
    %79 = vector.broadcast %cst_39 : f32 to vector<32x8xf32>
    %80 = arith.subf %71, %79 : vector<32x8xf32>
    %81 = arith.mulf %63, %80 : vector<32x8xf32>
    %82 = arith.mulf %81, %78 : vector<32x8xf32>
    %c0_40 = arith.constant 0 : index
    %c0_41 = arith.constant 0 : index
    %83 = vector.load %arg11[%c0_40, %c0_41] : memref<8x32xf32, #tpu.memory_space<vmem>>, vector<8x32xf32>
    %cst_42 = arith.constant dense<0.000000e+00> : vector<8x8xf32>
    %84 = tpu.matmul %83, %82, %cst_42 {dimension_numbers = #tpu.dot_dimension_numbers<[1], [0], [0], [1], [0, 0, 1, 1], [], []>} : vector<8x32xf32>, vector<32x8xf32>, vector<8x8xf32> -> vector<8x8xf32>
    %c0_43 = arith.constant 0 : index
    %c0_44 = arith.constant 0 : index
    %85 = vector.load %arg12[%c0_43, %c0_44] : memref<8x1xf32, #tpu.memory_space<vmem>>, vector<8x1xf32>
    %86 = vector.broadcast %85 : vector<8x1xf32> to vector<8x8xf32>
    %87 = arith.addf %84, %86 : vector<8x8xf32>
    %88 = arith.addf %87, %27 : vector<8x8xf32>
    %89 = tpu.transpose %88, [1, 0] : vector<8x8xf32> -> vector<8x8xf32>
    %c0_45 = arith.constant 0 : index
    %c0_46 = arith.constant 0 : index
    %90 = vector.load %arg13[%c0_45, %c0_46] : memref<8x8xf32, #tpu.memory_space<vmem>>, vector<8x8xf32>
    tpu.vector_store %arg13[%c0_45, %c0_46], %89 {strides = array<i32>} : memref<8x8xf32, #tpu.memory_space<vmem>>, vector<8x8xf32>,
    return
  }
  func.func @transform_0(%arg0: i32) -> (i32, i32) {
    %c0_i32 = arith.constant 0 : i32
    %c0_i32_0 = arith.constant 0 : i32
    return %arg0, %c0_i32 : i32, i32
  }
  func.func @transform_1(%arg0: i32) -> (i32, i32) {
    %c0_i32 = arith.constant 0 : i32
    %c0_i32_0 = arith.constant 0 : i32
    return %arg0, %c0_i32 : i32, i32
  }
  func.func @transform_2(%arg0: i32) -> (i32, i32) {
    %c0_i32 = arith.constant 0 : i32
    %c0_i32_0 = arith.constant 0 : i32
    %c0_i32_1 = arith.constant 0 : i32
    return %c0_i32, %c0_i32_0 : i32, i32
  }
  func.func @transform_3(%arg0: i32) -> (i32, i32) {
    %c0_i32 = arith.constant 0 : i32
    %c0_i32_0 = arith.constant 0 : i32
    %c0_i32_1 = arith.constant 0 : i32
    return %c0_i32, %c0_i32_0 : i32, i32
  }
  func.func @transform_4(%arg0: i32) -> (i32, i32) {
    %c0_i32 = arith.constant 0 : i32
    %c0_i32_0 = arith.constant 0 : i32
    %c0_i32_1 = arith.constant 0 : i32
    return %c0_i32, %c0_i32_0 : i32, i32
  }
  func.func @transform_5(%arg0: i32) -> (i32, i32) {
    %c0_i32 = arith.constant 0 : i32
    %c0_i32_0 = arith.constant 0 : i32
    %c0_i32_1 = arith.constant 0 : i32
    return %c0_i32, %c0_i32_0 : i32, i32
  }
  func.func @transform_6(%arg0: i32) -> (i32, i32) {
    %c0_i32 = arith.constant 0 : i32
    %c0_i32_0 = arith.constant 0 : i32
    %c0_i32_1 = arith.constant 0 : i32
    return %c0_i32, %c0_i32_0 : i32, i32
  }
  func.func @transform_7(%arg0: i32) -> (i32, i32) {
    %c0_i32 = arith.constant 0 : i32
    %c0_i32_0 = arith.constant 0 : i32
    %c0_i32_1 = arith.constant 0 : i32
    return %c0_i32, %c0_i32_0 : i32, i32
  }
  func.func @transform_8(%arg0: i32) -> (i32, i32) {
    %c0_i32 = arith.constant 0 : i32
    %c0_i32_0 = arith.constant 0 : i32
    %c0_i32_1 = arith.constant 0 : i32
    return %c0_i32, %c0_i32_0 : i32, i32
  }
  func.func @transform_9(%arg0: i32) -> (i32, i32) {
    %c0_i32 = arith.constant 0 : i32
    %c0_i32_0 = arith.constant 0 : i32
    %c0_i32_1 = arith.constant 0 : i32
    return %c0_i32, %c0_i32_0 : i32, i32
  }
  func.func @transform_10(%arg0: i32) -> (i32, i32) {
    %c0_i32 = arith.constant 0 : i32
    %c0_i32_0 = arith.constant 0 : i32
    %c0_i32_1 = arith.constant 0 : i32
    return %c0_i32, %c0_i32_0 : i32, i32
  }
  func.func @transform_11(%arg0: i32) -> (i32, i32) {
    %c0_i32 = arith.constant 0 : i32
    %c0_i32_0 = arith.constant 0 : i32
    %c0_i32_1 = arith.constant 0 : i32
    return %c0_i32, %c0_i32_0 : i32, i32
  }
  func.func @transform_12(%arg0: i32) -> (i32, i32) {
    %c0_i32 = arith.constant 0 : i32
    %c0_i32_0 = arith.constant 0 : i32
    return %arg0, %c0_i32 : i32, i32
  }
}

</mosaic_0001>

<bundles_post_ra>
// kernel: tpu_custom_call.1
= control target key start
LH: loop header
LB: loop body
LE: loop exit
PB: predicated region body
PF: predicated region fallthrough
CT: control target
= control target key end

     0   :  { %vm79_vm0 = vcmask 130048   ;;  %v941_v1 = vmov 0.0   ;;  %vm942_vm1 = vmmov 0   ;;  %v943_v4 = vmov 0   ;;  %s1158_s0 = inlined_call_operand.vmem [shape: f32[8,16], index: 0, kind: input, shape index: {}]   ;;  %s1159_s1 = inlined_call_operand.vmem [shape: f32[8,12], index: 1, kind: input, shape index: {}]   ;;  %s1160_s2 = inlined_call_operand.vmem [shape: f32[40,16], index: 2, kind: input, shape index: {}]   ;;  %s1161_s3 = inlined_call_operand.vmem [shape: f32[40,1], index: 3, kind: input, shape index: {}]   ;;  %s1162_s4 = inlined_call_operand.vmem [shape: f32[8,32], index: 4, kind: input, shape index: {}]   ;;  %s1163_s5 = inlined_call_operand.vmem [shape: f32[8,1], index: 5, kind: input, shape index: {}]   ;;  %s1164_s6 = inlined_call_operand.vmem [shape: f32[8,12], index: 6, kind: input, shape index: {}]   ;;  %s1165_s7 = inlined_call_operand.vmem [shape: f32[8,1], index: 7, kind: input, shape index: {}]   ;;  %s1166_s8 = inlined_call_operand.vmem [shape: f32[32,8], index: 8, kind: input, shape index: {}]   ;;  %s1167_s9 = inlined_call_operand.vmem [shape: f32[32,1], index: 9, kind: input, shape index: {}]   ;;  %s1168_s10 = inlined_call_operand.vmem [shape: f32[8,32], index: 10, kind: input, shape index: {}]   ;;  %s1169_s11 = inlined_call_operand.vmem [shape: f32[8,1], index: 11, kind: input, shape index: {}]   ;;  %s1170_s12 = inlined_call_operand.hbm [shape: f32[8,8], index: 12, kind: output, shape index: {}]  }
   0x1   :  { %v42_v0 = vld [vmem:[%s1158_s0] sm:$0xff]  ;;  %819 = vmatprep.subr.mxu0 %v941_v1  ;;  %821 = vmatprep.mubr.msk.f32.mxu0 %vm942_vm1, %v941_v1  ;;  %v52_v2 = vld [vmem:[%s1161_s3 + $0x18] sm:$0xff]  ;;  %v50_v5 = vld [vmem:[%s1161_s3 + $0x8] sm:$0xff] }
   0x2   :  { %820 = vmatpush3.xpose.msk.msra.mxu0 %vm79_vm0, %v42_v0  ;;  %v44_v3 = vld [vmem:[%s1160_s2] sm:$0xff]  ;;  %877 = vset.pattern.permute.xlu0 %v943_v4  ;;  %v51_v6 = vld [vmem:[%s1161_s3 + $0x10] sm:$0xff]  ;;  %v45_v8 = vld [vmem:[%s1160_s2 + $0x8] sm:$0xff] }
   0x3   :  { %71 = vperm.xlu0 %877, %v52_v2   ;;  %878 = vset.pattern.permute.xlu1 %v943_v4  ;;  %v49_v7 = vld [vmem:[%s1161_s3] sm:$0xff] }
   0x4   :  { %61 = vperm.xlu1 %878, %v50_v5   ;;  %836 = vmatprep.subr.mxu1 %v941_v1 }
   0x5   :  { %822 = vmatmul.mubr.msk.f32.vlgmr.msra.gmra.mxu0 %vm79_vm0, %v44_v3  ;;  %844 = vmatprep.mubr.msk.f32.mxu1 %vm942_vm1, %v941_v1 }
   0x6   :  { %824 = vmatprep.mubr.msk.f32.mxu0 %vm942_vm1, %v941_v1  ;;  %862 = vmatprep.subr.mxu0 %v941_v1 }
   0x7   :  { %17 = vsyncpa [#allocation3], 0  ;;  %66 = vperm.xlu0 %877, %v51_v6   ;;  %v241_v9 = vld [vmem:[%s1163_s5] sm:$0xff]  ;;  %v46_v10 = vld [vmem:[%s1160_s2 + $0x10] sm:$0xff]  ;;  %vm247_vm2 = vcmask 261120   ;;  %vm390_vm3 = vcmask 1043456  }
   0x8   :  { %56 = vperm.xlu1 %878, %v49_v7   ;;  %v380_v11 = vld [vmem:[%s1165_s7] sm:$0xff]  ;;  %v47_v12 = vld [vmem:[%s1160_s2 + $0x18] sm:$0xff]  ;;  %v471_v15 = vld [vmem:[%s1167_s9 + $0x10] sm:$0xff]  ;;  %vm386_vm4 = vcmask 97280   ;;  %vm493_vm5 = vcmask 64512   ;;  %s944_s24 = smov [#allocation2]  }
   0x9   :  { %825 = vmatmul.mubr.msk.f32.gmra.mxu0 %vm79_vm0, %v45_v8  ;;  %v472_v13 = vld [vmem:[%s1167_s9 + $0x18] sm:$0xff]  ;;  %v48_v14 = vld [vmem:[%s1160_s2 + $0x20] sm:$0xff]  ;;  %v470_v16 = vld [vmem:[%s1167_s9 + $0x8] sm:$0xff]  ;;  %s763_s25 = sshll.u32 %s944_s24, 4  ;;  %s764_s25 = int_to_ptr.vmem [resolvable:$true] %s763_s25 }
   0xa   :  { %827 = vmatprep.mubr.msk.f32.mxu0 %vm942_vm1, %v941_v1  ;;  %v469_v17 = vld [vmem:[%s1167_s9] sm:$0xff]  ;;  %p924_p1 = scmp.lt.s32.totalorder %s764_s25, %s764_s25 }
   0xb   :  { %v53_v18 = vld [vmem:[%s1161_s3 + $0x20] sm:$0xff] }
   0xc   :  { %244 = vperm.xlu1 %878, %v241_v9   ;;  %v43_v19 = vld [vmem:[%s1159_s1] sm:$0xff] }
   0xd   :  { %828 = vmatmul.mubr.msk.f32.gmra.mxu0 %vm79_vm0, %v46_v10  ;;  %v644_v20 = vld [vmem:[%s1169_s11] sm:$0xff] }
   0xe   :  { %830 = vmatprep.mubr.msk.f32.mxu0 %vm942_vm1, %v941_v1 }
  0x10   :  { %383 = vperm.xlu1 %878, %v380_v11  }
  0x11   :  { %831 = vmatmul.mubr.msk.f32.gmra.mxu0 %vm79_vm0, %v47_v12 }
  0x12   :  { %833 = vmatprep.mubr.msk.f32.mxu0 %vm942_vm1, %v941_v1 }
  0x14   :  { %490 = vperm.xlu1 %878, %v472_v13  }
  0x15   :  { %834 = vmatmul.mubr.msk.f32.gmra.mxu0 %vm79_vm0, %v48_v14 }
  0x16   :  { %870 = vmatprep.mubr.msk.f32.mxu0 %vm942_vm1, %v941_v1 }
  0x18   :  { %485 = vperm.xlu1 %878, %v471_v15  }
  0x1c   :  { %480 = vperm.xlu1 %878, %v470_v16  }
  0x20   :  { %475 = vperm.xlu1 %878, %v469_v17  }
  0x24   :  { %76 = vperm.xlu1 %878, %v53_v18  }
  0x25   :  { %321 = vxpose.xlu0.b32.start.end [1/1] (short) (narrow) %v43_v19, 16 }
  0x28   :  { %647 = vperm.xlu1 %878, %v644_v20  }
  0x7e   :  { %v72_v21 = vpop.permute.xlu0 %71 }
  0x7f   :  { %v62_v24 = vpop.permute.xlu1 %61 }
  0x82   :  { %v67_v22 = vpop.permute.xlu0 %66 }
  0x83   :  { %v57_v26 = vpop.permute.xlu1 %56 }
  0xa1   :  { %v1090_v23 = vpop.trf.xlu0 }
  0xa2   :  { %v353_v32 = vmin.f32 %v1090_v23, 20.0 }
  0xa4   :  { %v355_v39 = vmul.f32 1.442695, %v353_v32 }
  0xa5   :  { %v1092_v25 = vpop.trf.xlu0 }
  0xa6   :  { %v354_v29 = vmin.f32 %v1092_v25, 20.0 }
  0xa8   :  { %v357_v36 = vmul.f32 1.442695, %v354_v29 }
  0xc5   :  { %v164_v27 = vpop.f32.mrf.mxu0 }
  0xc6   :  { %v1094_v28 = vadd.f32 %v164_v27, %v57_v26 }
  0xc7   :  { %v823_v30 = vpop.f32.mrf.mxu0 }
  0xc8   :  { %v188_v31 = vmin.f32 %v1094_v28, 20.0 }
  0xc9   :  { %v169_v33 = vpop.f32.mrf.mxu0 }
  0xca   :  { %v192_v34 = vmul.f32 1.442695, %v188_v31  ;;  %v1099_v35 = vadd.f32 %v169_v33, %v62_v24 }
  0xcb   :  { %v826_v37 = vpop.f32.mrf.mxu0 }
  0xcc   :  { %v189_v38 = vmin.f32 %v1099_v35, 20.0  ;;  %879 = vpow2.f32 %v192_v34 }
  0xcd   :  { %v174_v40 = vpop.f32.mrf.mxu0  ;;  %881 = vpow2.f32 %v357_v36 }
  0xce   :  { %v194_v41 = vmul.f32 1.442695, %v189_v38  ;;  %v1102_v42 = vadd.f32 %v174_v40, %v67_v22 }
  0xcf   :  { %v829_v43 = vpop.f32.mrf.mxu0 }
  0xd0   :  { %883 = vpow2.f32 %v194_v41  ;;  %v190_v44 = vmin.f32 %v1102_v42, 20.0 }
  0xd1   :  { %885 = vpow2.f32 %v355_v39  ;;  %v179_v45 = vpop.f32.mrf.mxu0 }
  0xd2   :  { %v196_v46 = vmul.f32 1.442695, %v190_v44  ;;  %v180_v47 = vadd.f32 %v179_v45, %v72_v21 }
  0xd3   :  { %v832_v48 = vpop.f32.mrf.mxu0 }
  0xd4   :  { %887 = vpow2.f32 %v196_v46  ;;  %v191_v49 = vmin.f32 %v180_v47, 20.0 }
  0xd5   :  { %v1105_v50 = vpop.f32.mrf.mxu0 }
  0xd6   :  { %v198_v51 = vmul.f32 1.442695, %v191_v49 }
  0xd7   :  { %v835_v52 = vpop.f32.mrf.mxu0 }
  0xd8   :  { %889 = vpow2.f32 %v198_v51 }
  0xd9   :  { %v880_v53 = vpop.eup %879 }
  0xda   :  { %v882_v54 = vpop.eup %881  ;;  %v200_v57 = vadd.f32 1.0, %v880_v53 }
  0xdb   :  { %v360_v59 = vadd.f32 1.0, %v882_v54 }
  0xdc   :  { %v204_v63 = vmul.f32 %v200_v57, %v200_v57 }
  0xdd   :  { %v884_v55 = vpop.eup %883  ;;  %v362_v2 = vmul.f32 %v360_v59, %v360_v59  ;;  %v465_v59 = vld [vmem:[%s1166_s8] sm:$0xff] }
  0xde   :  { %v886_v56 = vpop.eup %885  ;;  %v201_v58 = vadd.f32 1.0, %v884_v55  ;;  %v208_v7 = vadd.f32 1.0, %v204_v63  ;;  %v777_v43 = vadd.f32 -1.0, %v204_v63 }
  0xdf   :  { %v359_v62 = vadd.f32 1.0, %v886_v56  ;;  %v364_v10 = vadd.f32 1.0, %v362_v2  ;;  %v783_v41 = vadd.f32 -1.0, %v362_v2 }
  0xe0   :  { %v205_v60 = vmul.f32 %v201_v58, %v201_v58  ;;  %v232_v55 = vmul.f32 %v777_v43, %v1094_v28 }
  0xe1   :  { %v888_v61 = vpop.eup %887  ;;  %v361_v6 = vmul.f32 %v359_v62, %v359_v62  ;;  %v376_v54 = vmul.f32 %v783_v41, %v1092_v25 }
  0xe2   :  { %v202_v0 = vadd.f32 1.0, %v888_v61  ;;  %v209_v3 = vadd.f32 1.0, %v205_v60  ;;  %v778_v34 = vadd.f32 -1.0, %v205_v60  ;;  %v245_v60 = vpop.permute.xlu1 %244 }
  0xe3   :  { %v363_v12 = vadd.f32 1.0, %v361_v6  ;;  %v782_v48 = vadd.f32 -1.0, %v361_v6  ;;  %v466_v6 = vld [vmem:[%s1166_s8 + $0x8] sm:$0xff] }
  0xe4   :  { %v206_v4 = vmul.f32 %v202_v0, %v202_v0  ;;  %891 = vrcp.f32 %v209_v3  ;;  %v233_v51 = vmul.f32 %v778_v34, %v1099_v35  ;;  %v240_v35 = vld [vmem:[%s1162_s4] sm:$0xff] }
  0xe5   :  { %v890_v5 = vpop.eup %889  ;;  %v375_v57 = vmul.f32 %v782_v48, %v1090_v23  ;;  %v379_v23 = vld [vmem:[%s1164_s6] sm:$0xff] }
  0xe6   :  { %v210_v8 = vadd.f32 1.0, %v206_v4  ;;  %v203_v9 = vadd.f32 1.0, %v890_v5  ;;  %v779_v30 = vadd.f32 -1.0, %v206_v4  ;;  %v384_v63 = vpop.permute.xlu1 %383 }
  0xe8   :  { %893 = vrcp.f32 %v210_v8  ;;  %v207_v11 = vmul.f32 %v203_v9, %v203_v9  ;;  %v234_v44 = vmul.f32 %v779_v30, %v1102_v42 }
  0xe9   :  { %895 = vrcp.f32 %v208_v7 }
  0xea   :  { %v211_v13 = vadd.f32 1.0, %v207_v11  ;;  %897 = vrcp.f32 %v364_v10  ;;  %v780_v22 = vadd.f32 -1.0, %v207_v11  ;;  %v491_v9 = vpop.permute.xlu1 %490 }
  0xec   :  { %899 = vrcp.f32 %v211_v13  ;;  %v235_v36 = vmul.f32 %v780_v22, %v180_v47 }
  0xed   :  { %901 = vrcp.f32 %v363_v12 }
  0xf1   :  { %v892_v14 = vpop.eup %891 }
  0xf2   :  { %v217_v19 = vmul.f32 %v892_v14, %v209_v3 }
  0xf4   :  { %v221_v32 = vsub.f32 2.0, %v217_v19 }
  0xf5   :  { %v894_v15 = vpop.eup %893 }
  0xf6   :  { %v218_v16 = vmul.f32 %v894_v15, %v210_v8  ;;  %v896_v17 = vpop.eup %895  ;;  %v225_v46 = vmul.f32 %v892_v14, %v221_v32  ;;  %v468_v8 = vld [vmem:[%s1166_s8 + $0x18] sm:$0xff] }
  0xf7   :  { %v898_v18 = vpop.eup %897  ;;  %v216_v27 = vmul.f32 %v896_v17, %v208_v7  ;;  %v467_v7 = vld [vmem:[%s1166_s8 + $0x10] sm:$0xff] }
  0xf8   :  { %v222_v26 = vsub.f32 2.0, %v218_v16  ;;  %v368_v29 = vmul.f32 %v898_v18, %v364_v10  ;;  %v237_v56 = vmul.f32 %v233_v51, %v225_v46  ;;  %v486_v10 = vpop.permute.xlu1 %485 }
  0xf9   :  { %v900_v20 = vpop.eup %899  ;;  %v220_v39 = vsub.f32 2.0, %v216_v27 }
  0xfa   :  { %v902_v21 = vpop.eup %901  ;;  %v219_v24 = vmul.f32 %v900_v20, %v211_v13  ;;  %v226_v38 = vmul.f32 %v894_v15, %v222_v26  ;;  %v370_v40 = vsub.f32 2.0, %v368_v29 }
  0xfb   :  { %v367_v33 = vmul.f32 %v902_v21, %v363_v12  ;;  %v224_v53 = vmul.f32 %v896_v17, %v220_v39 }
  0xfc   :  { %v223_v31 = vsub.f32 2.0, %v219_v24  ;;  %v238_v52 = vmul.f32 %v234_v44, %v226_v38  ;;  %v372_v47 = vmul.f32 %v898_v18, %v370_v40  ;;  %v481_v11 = vpop.permute.xlu1 %480 }
  0xfd   :  { %v369_v49 = vsub.f32 2.0, %v367_v33  ;;  %v236_v58 = vmul.f32 %v232_v55, %v224_v53 }
  0xfe   :  { %v227_v37 = vmul.f32 %v900_v20, %v223_v31  ;;  %v378_v25 = vmul.f32 %v376_v54, %v372_v47 }
  0xff   :  { %v371_v42 = vmul.f32 %v902_v21, %v369_v49 }
 0x100   :  { %v239_v45 = vmul.f32 %v235_v36, %v227_v37  ;;  %v476_v14 = vpop.permute.xlu1 %475 }
 0x101   :  { %v377_v28 = vmul.f32 %v375_v57, %v371_v42 }
 0x102   :  { %837 = vmatpush3.msra.mxu1 %v239_v45 }
 0x103   :  { %838 = vmatprep.subr.mxu1 %v941_v1 }
 0x104   :  { %839 = vmatpush3.msra.mxu1 %v238_v52 }
 0x105   :  { %840 = vmatprep.subr.mxu1 %v941_v1 }
 0x106   :  { %841 = vmatpush3.msra.mxu1 %v237_v56 }
 0x107   :  { %842 = vmatprep.subr.mxu1 %v941_v1 }
 0x108   :  { %843 = vmatpush3.msra.mxu1 %v236_v58 }
 0x109   :  { %845 = vmatmul.mubr.msk.f32.vlgmr.msra.gmra.mxu1 %vm247_vm2, %v240_v35  ;;  %847 = vmatprep.subr.mxu1 %v941_v1 }
 0x10a   :  { %848 = vmatpush3.msk.msra.mxu1 %vm390_vm3, %v378_v25  ;;  %851 = vmatprep.mubr.msk.f32.mxu1 %vm942_vm1, %v941_v1 }
 0x10b   :  { %849 = vmatprep.subr.mxu1 %v941_v1 }
 0x10c   :  { %850 = vmatpush3.msra.mxu1 %v377_v28 }
 0x10d   :  { %852 = vmatmul.mubr.msk.f32.vlgmr.msra.gmra.mxu1 %vm386_vm4, %v379_v23 }
 0x10e   :  { %856 = vmatprep.mubr.msk.f32.mxu1 %vm493_vm5, %v465_v59 }
 0x1c9   :  { %v317_v61 = vpop.f32.mrf.mxu1 }
 0x1ca   :  { %v318_v2 = vadd.f32 %v317_v61, %v245_v60 }
 0x1cb   :  { %v846_v62 = vpop.f32.mrf.mxu1 }
 0x1cd   :  { %v460_v0 = vpop.f32.mrf.mxu1 }
 0x1ce   :  { %v461_v3 = vadd.f32 %v460_v0, %v384_v63 }
 0x1cf   :  { %v853_v4 = vpop.f32.mrf.mxu1 }
 0x1d0   :  { %v464_v5 = vadd.f32 %v461_v3, %v318_v2 }
 0x1d2   :  { %854 = vmatprep.subr.mxu1 %v464_v5 }
 0x1d3   :  { %855 = vmatpush3.msra.mxu1 %v464_v5 }
 0x1d4   :  { %857 = vmatmul.mubr.msk.f32.vlgmr.msra.gmra.mxu1 %vm493_vm5, %v466_v6 }
 0x1d5   :  { %859 = vmatprep.mubr.msk.f32.mxu1 %vm493_vm5, %v467_v7 }
 0x1d8   :  { %860 = vmatmul.mubr.msk.f32.gmra.mxu1 %vm493_vm5, %v468_v8 }
 0x294   :  { %v858_v12 = vpop.f32.mrf.mxu1 }
 0x295   :  { %v578_v13 = vadd.f32 %v858_v12, %v481_v11  ;;  %v643_v11 = vld [vmem:[%s1168_s10] sm:$0xff]  ;;  %v77_v12 = vpop.permute.xlu1 %76  ;;  %s919_s10 = scalar_lea.vmem %s764_s25, 128 }
 0x296   :  { %v572_v15 = vpop.f32.mrf.mxu1  ;;  %p920_p0 = scmp.ne.s32.totalorder %s764_s25, %s919_s10  ;;  %p925_p2 = scmp.lt.s32.totalorder %s919_s10, %s919_s10 }
 0x297   :  { %v592_v16 = vmin.f32 %v578_v13, 20.0  ;;  %v1142_v17 = vadd.f32 %v572_v15, %v476_v14  ;;  %v185_v15 = vadd.f32 %v1105_v50, %v77_v12 }
 0x298   :  { %v861_v18 = vpop.f32.mrf.mxu1  ;;  %p926_p3 = por %p925_p2, %p924_p1 }
 0x299   :  { %v597_v19 = vmul.f32 1.442695, %v592_v16  ;;  %v591_v20 = vmin.f32 %v1142_v17, 20.0  ;;  %v588_v21 = vadd.f32 %v861_v18, %v491_v9 }
 0x29a   :  { %v582_v22 = vpop.f32.mrf.mxu1  ;;  %p927_p4 = pnand %p926_p3, %p920_p0 }
 0x29b   :  { %903 = vpow2.f32 %v597_v19  ;;  %v595_v24 = vmul.f32 1.442695, %v591_v20  ;;  %v594_v26 = vmin.f32 %v588_v21, 20.0  ;;  %v583_v27 = vadd.f32 %v582_v22, %v486_v10 }
 0x29d   :  { %905 = vpow2.f32 %v595_v24  ;;  %v601_v29 = vmul.f32 1.442695, %v594_v26  ;;  %v593_v30 = vmin.f32 %v583_v27, 20.0 }
 0x29f   :  { %907 = vpow2.f32 %v601_v29  ;;  %v599_v31 = vmul.f32 1.442695, %v593_v30 }
 0x2a1   :  { %909 = vpow2.f32 %v599_v31 }
 0x2a8   :  { %v904_v32 = vpop.eup %903 }
 0x2a9   :  { %v604_v33 = vadd.f32 1.0, %v904_v32 }
 0x2aa   :  { %v906_v34 = vpop.eup %905 }
 0x2ab   :  { %v608_v36 = vmul.f32 %v604_v33, %v604_v33  ;;  %v603_v37 = vadd.f32 1.0, %v906_v34 }
 0x2ac   :  { %v908_v38 = vpop.eup %907 }
 0x2ad   :  { %v612_v39 = vadd.f32 1.0, %v608_v36  ;;  %v607_v40 = vmul.f32 %v603_v37, %v603_v37  ;;  %v606_v41 = vadd.f32 1.0, %v908_v38  ;;  %v791_v23 = vadd.f32 -1.0, %v608_v36 }
 0x2ae   :  { %v910_v43 = vpop.eup %909 }
 0x2af   :  { %v611_v44 = vadd.f32 1.0, %v607_v40  ;;  %911 = vrcp.f32 %v612_v39  ;;  %v610_v45 = vmul.f32 %v606_v41, %v606_v41  ;;  %v605_v46 = vadd.f32 1.0, %v910_v43 }
 0x2b0   :  { %v790_v63 = vadd.f32 -1.0, %v607_v40  ;;  %v636_v5 = vmul.f32 %v791_v23, %v578_v13  ;;  %v648_v13 = vpop.permute.xlu1 %647 }
 0x2b1   :  { %913 = vrcp.f32 %v611_v44  ;;  %v614_v48 = vadd.f32 1.0, %v610_v45  ;;  %v609_v49 = vmul.f32 %v605_v46, %v605_v46  ;;  %v793_v42 = vadd.f32 -1.0, %v610_v45 }
 0x2b2   :  { %v635_v9 = vmul.f32 %v790_v63, %v1142_v17 }
 0x2b3   :  { %915 = vrcp.f32 %v614_v48  ;;  %v613_v51 = vadd.f32 1.0, %v609_v49  ;;  %v792_v28 = vadd.f32 -1.0, %v609_v49  ;;  %v638_v61 = vmul.f32 %v793_v42, %v588_v21 }
 0x2b5   :  { %917 = vrcp.f32 %v613_v51  ;;  %v637_v4 = vmul.f32 %v792_v28, %v583_v27 }
 0x2bc   :  { %v912_v52 = vpop.eup %911 }
 0x2bd   :  { %v620_v47 = vmul.f32 %v912_v52, %v612_v39 }
 0x2be   :  { %v914_v53 = vpop.eup %913 }
 0x2bf   :  { %v619_v55 = vmul.f32 %v914_v53, %v611_v44  ;;  %v624_v58 = vsub.f32 2.0, %v620_v47 }
 0x2c0   :  { %v916_v54 = vpop.eup %915 }
 0x2c1   :  { %v622_v56 = vmul.f32 %v916_v54, %v614_v48  ;;  %v623_v59 = vsub.f32 2.0, %v619_v55  ;;  %v628_v0 = vmul.f32 %v912_v52, %v624_v58 }
 0x2c2   :  { %v918_v57 = vpop.eup %917 }
 0x2c3   :  { %v626_v35 = vsub.f32 2.0, %v622_v56  ;;  %v621_v25 = vmul.f32 %v918_v57, %v613_v51  ;;  %v627_v6 = vmul.f32 %v914_v53, %v623_v59  ;;  %v640_v8 = vmul.f32 %v636_v5, %v628_v0 }
 0x2c5   :  { %v630_v60 = vmul.f32 %v916_v54, %v626_v35  ;;  %v625_v62 = vsub.f32 2.0, %v621_v25  ;;  %v639_v10 = vmul.f32 %v635_v9, %v627_v6 }
 0x2c7   :  { %v642_v2 = vmul.f32 %v638_v61, %v630_v60  ;;  %v629_v3 = vmul.f32 %v918_v57, %v625_v62 }
 0x2c9   :  { %v641_v7 = vmul.f32 %v637_v4, %v629_v3  ;;  %863 = vmatpush3.msra.mxu0 %v642_v2 }
 0x2ca   :  { %864 = vmatprep.subr.mxu0 %v941_v1 }
 0x2cb   :  { %865 = vmatpush3.msra.mxu0 %v641_v7 }
 0x2cc   :  { %866 = vmatprep.subr.mxu0 %v941_v1 }
 0x2cd   :  { %867 = vmatpush3.msra.mxu0 %v640_v8 }
 0x2ce   :  { %868 = vmatprep.subr.mxu0 %v941_v1 }
 0x2cf   :  { %869 = vmatpush3.msra.mxu0 %v639_v10 }
 0x2d0   :  { %871 = vmatmul.mubr.msk.f32.vlgmr.msra.gmra.mxu0 %vm247_vm2, %v643_v11 }
 0x390   :  { %v719_v14 = vpop.f32.mrf.mxu0 }
 0x391   :  { %v720_v16 = vadd.f32 %v719_v14, %v648_v13 }
 0x392   :  { %v872_v17 = vpop.f32.mrf.mxu0 }
 0x393   :  { %v723_v18 = vadd.f32 %v720_v16, %v185_v15 }
 0x395   :  { %724 = vxpose.xlu0.b32.start.end [1/1] (short) (narrow) %v723_v18, 8 }
 0x411   :  { %v740_v19 = vpop.trf.xlu0 }
 0x412   :  { %756 = vst.msk [vmem:[#allocation2] sm:$0xff] %vm493_vm5, %v740_v19 }
 0x413   :  { %930 = shalt.err (!%p927_p4)
}
 0x414   :  { %766 = dma.vmem_to_hbm [thread:$0]  %s764_s25, 128, %s1170_s12, [#allocation3]  }
 0x415   :  { %939 = dma.done.wait [#allocation3], 128  }
 0x416   :  { %940 = vsyncadd [#allocation3], 4294967168 }
 0x417   :  { %770 = vsyncpa [#allocation3], 1 }

</bundles_post_ra>
